<compile_context>
chip_gen: v7x
topology: tpu7x:2x2x1
jax: 0.10.0
libtpu: 0.0.40
codegen_flags: <defaults>
</compile_context>

<pallas_src>
import jax
import jax.numpy as jnp
from jax.experimental import pallas as pl
from jax.experimental.pallas import tpu as pltpu


def _conv1x1_wx_kernel(w_ref, x_ref, o_ref):
    # w_ref: (C_out, C_in) bf16, x_ref: (C_in, H*W) bf16 -> o_ref: (C_out, H*W) f32
    o_ref[...] = jnp.dot(
        w_ref[...], x_ref[...], preferred_element_type=jnp.float32
    ).astype(o_ref.dtype)


def conv2d_1x1(x_nchw: jax.Array, weight: jax.Array) -> jax.Array:
    """1x1 conv, stride 1, no bias.

    x_nchw: (N, C_in, H, W)
    weight: (C_out, C_in, 1, 1)   (PyTorch layout)
    returns: (N, C_out, H, W) float32
    """
    N, C_in, H, W = x_nchw.shape
    C_out = weight.shape[0]
    HW = H * W

    # Free views (no transposes, no pads); bf16 cast halves input HBM bytes.
    x = x_nchw.reshape(N, C_in, HW).astype(jnp.bfloat16)
    w = weight.reshape(C_out, C_in).astype(jnp.bfloat16)

    flops = 2 * N * HW * C_in * C_out
    bytes_accessed = (N * C_in * HW + C_out * C_in) * 2 + N * C_out * HW * 4

    out = pl.pallas_call(
        _conv1x1_wx_kernel,
        out_shape=jax.ShapeDtypeStruct((N, C_out, HW), jnp.float32),
        grid=(N,),
        in_specs=[
            # Weight: one resident block, reused every grid step.
            pl.BlockSpec((C_out, C_in), lambda n: (0, 0)),
            # Activations: one full (C_in, HW) slab per batch element.
            # Lane dim = HW equals the full array dim -> legal even though 196
            # is not a multiple of 128 (Mosaic pads the VMEM tile internally).
            pl.BlockSpec((None, C_in, HW), lambda n: (n, 0, 0)),
        ],
        out_specs=pl.BlockSpec((None, C_out, HW), lambda n: (n, 0, 0)),
        compiler_params=pltpu.CompilerParams(
            dimension_semantics=("parallel",),
        ),
        cost_estimate=pl.CostEstimate(
            flops=flops, transcendentals=0, bytes_accessed=bytes_accessed
        ),
    )(w, x)

    # (N, C_out, H*W) -> (N, C_out, H, W): free view, already NCHW.
    return out.reshape(N, C_out, H, W)


if __name__ == "__main__":
    key = jax.random.PRNGKey(0)
    k_x, k_w = jax.random.split(key)

    # Shapes implied by the module: Conv2d(768, 192, 1x1) on [1, 768, 14, 14].
    N, C_in, H, W = 1, 768, 14, 14
    C_out = 192

    x = jax.random.normal(k_x, (N, C_in, H, W), dtype=jnp.float32)
    # Deterministic synthetic weights (kaiming-uniform-ish scale).
    bound = 1.0 / (C_in ** 0.5)
    weight = jax.random.uniform(
        k_w, (C_out, C_in, 1, 1), minval=-bound, maxval=bound, dtype=jnp.float32
    )

    conv = jax.jit(conv2d_1x1)
    y = jax.block_until_ready(conv(x, weight))

    # Reference check in plain f32 JAX (1x1 conv == channel matmul).
    # Tolerance relaxed because kernel inputs are cast to bf16 (f32 accumulate).
    ref = jnp.einsum("nchw,oc->nohw", x, weight.reshape(C_out, C_in))
    assert y.shape == (N, C_out, H, W)
    assert y.dtype == jnp.float32
    assert jnp.allclose(y, ref, atol=2e-2, rtol=2e-2), float(
        jnp.max(jnp.abs(y - ref))
    )

    print("KERNEL_OK")
</pallas_src>

<mosaic_0001>
module attributes {stable_mosaic.version = 11 : i64} {
  func.func @_conv1x1_wx_kernel(%arg0: i32, %arg1: memref<192x768xbf16, #tpu.memory_space<vmem>>, %arg2: memref<1x768x196xbf16, #tpu.memory_space<vmem>>, %arg3: memref<1x192x196xf32, #tpu.memory_space<vmem>>) attributes {dimension_semantics = [#tpu.dimension_semantics<parallel>], iteration_bounds = array<i64: 1>, scalar_prefetch = 0 : i64, scratch_operands = 0 : i64, tpu.core_type = #tpu.core_type<tc>, window_params = [{pipeline_mode = #tpu.pipeline_mode<synchronous>, transform_indices = @transform_0, window_bounds = array<i64: 192, 768>}, {transform_indices = @transform_1, window_bounds = array<i64: 1, 768, 196>}, {transform_indices = @transform_2, window_bounds = array<i64: 1, 192, 196>}]} {
    %c0 = arith.constant 0 : index
    %c0_0 = arith.constant 0 : index
    %0 = vector.load %arg1[%c0, %c0_0] : memref<192x768xbf16, #tpu.memory_space<vmem>>, vector<192x768xbf16>
    %c0_1 = arith.constant 0 : index
    %c0_2 = arith.constant 0 : index
    %c0_3 = arith.constant 0 : index
    %1 = vector.load %arg2[%c0_1, %c0_2, %c0_3] : memref<1x768x196xbf16, #tpu.memory_space<vmem>>, vector<1x768x196xbf16>
    %2 = vector.shape_cast %1 : vector<1x768x196xbf16> to vector<768x196xbf16>
    %cst = arith.constant dense<0.000000e+00> : vector<192x196xf32>
    %3 = tpu.matmul %0, %2, %cst {dimension_numbers = #tpu.dot_dimension_numbers<[1], [0], [0], [1], [0, 0, 1, 1], [], []>} : vector<192x768xbf16>, vector<768x196xbf16>, vector<192x196xf32> -> vector<192x196xf32>
    %c0_4 = arith.constant 0 : index
    %c0_5 = arith.constant 0 : index
    %c0_6 = arith.constant 0 : index
    %4 = vector.load %arg3[%c0_4, %c0_5, %c0_6] : memref<1x192x196xf32, #tpu.memory_space<vmem>>, vector<1x192x196xf32>
    %5 = vector.shape_cast %4 : vector<1x192x196xf32> to vector<192x196xf32>
    %6 = vector.shape_cast %3 : vector<192x196xf32> to vector<1x192x196xf32>
    tpu.vector_store %arg3[%c0_4, %c0_5, %c0_6], %6 {strides = array<i32>} : memref<1x192x196xf32, #tpu.memory_space<vmem>>, vector<1x192x196xf32>,
    return
  }
  func.func @transform_0(%arg0: i32) -> (i32, i32) {
    %c0_i32 = arith.constant 0 : i32
    %c0_i32_0 = arith.constant 0 : i32
    %c0_i32_1 = arith.constant 0 : i32
    return %c0_i32, %c0_i32_0 : i32, i32
  }
  func.func @transform_1(%arg0: i32) -> (i32, i32, i32) {
    %c0_i32 = arith.constant 0 : i32
    %c0_i32_0 = arith.constant 0 : i32
    %c0_i32_1 = arith.constant 0 : i32
    return %arg0, %c0_i32, %c0_i32_0 : i32, i32, i32
  }
  func.func @transform_2(%arg0: i32) -> (i32, i32, i32) {
    %c0_i32 = arith.constant 0 : i32
    %c0_i32_0 = arith.constant 0 : i32
    %c0_i32_1 = arith.constant 0 : i32
    return %arg0, %c0_i32, %c0_i32_0 : i32, i32, i32
  }
}

</mosaic_0001>

<bundles_post_ra>
// kernel: conv2d_1x1.1
= control target key start
LH: loop header
LB: loop body
LE: loop exit
PB: predicated region body
PF: predicated region fallthrough
CT: control target
= control target key end

     0   :  { %vm1479_vm0 = vcmask 556032   ;;  %s2910_s1 = inlined_call_operand.vmem [shape: bf16[1,768,196], index: 1, kind: input, shape index: {}]   ;;  %s2911_s0 = inlined_call_operand.vmem [shape: bf16[192,768], index: 0, kind: input, shape index: {}]   ;;  %s2912_s2 = inlined_call_operand.vmem [shape: f32[1,192,196], index: 2, kind: output, shape index: {}]  }
   0x1   :  { %v1827_v0 = vld [vmem:[%s2910_s1 + $0x4] ss:$8 sps:$4 sm:$0xff]   ;;  %v1831_v2 = vld [vmem:[%s2910_s1] ss:$8 sps:$4 sm:$0xff]   ;;  %v1833_v4 = vld [vmem:[%s2910_s1 + $0x14] ss:$8 sps:$4 sm:$0xff]  }
   0x2   :  { %v1829_v1 = vld [vmem:[%s2910_s1 + $0x104] ss:$8 sps:$4 sm:$0xff]   ;;  %1019 = vmatprep.subr.bf16.mxu1 %v1827_v0  ;;  %v1832_v3 = vld [vmem:[%s2910_s1 + $0x100] ss:$8 sps:$4 sm:$0xff]   ;;  %v1835_v5 = vld [vmem:[%s2910_s1 + $0x114] ss:$8 sps:$4 sm:$0xff]  }
   0x3   :  { %1172 = vmatprep.subr.bf16.mxu0 %v1829_v1  ;;  %1020 = vmatpush1.bf16.msra.mxu1 %v1831_v2  ;;  %v1837_v6 = vld [vmem:[%s2910_s1 + $0x10] ss:$8 sps:$4 sm:$0xff]   ;;  %v1839_v8 = vld [vmem:[%s2910_s1 + $0x24] ss:$8 sps:$4 sm:$0xff]   ;;  %v1843_v10 = vld [vmem:[%s2910_s1 + $0x20] ss:$8 sps:$4 sm:$0xff]  }
   0x4   :  { %1173 = vmatpush1.bf16.msra.mxu0 %v1832_v3  ;;  %1021 = vmatprep.subr.bf16.mxu1 %v1833_v4  ;;  %v1838_v7 = vld [vmem:[%s2910_s1 + $0x110] ss:$8 sps:$4 sm:$0xff]   ;;  %v1841_v9 = vld [vmem:[%s2910_s1 + $0x124] ss:$8 sps:$4 sm:$0xff]   ;;  %v1844_v11 = vld [vmem:[%s2910_s1 + $0x120] ss:$8 sps:$4 sm:$0xff]  }
   0x5   :  { %1174 = vmatprep.subr.bf16.mxu0 %v1835_v5  ;;  %v1845_v12 = vld [vmem:[%s2910_s1 + $0x34] ss:$8 sps:$4 sm:$0xff]   ;;  %v1849_v14 = vld [vmem:[%s2910_s1 + $0x30] ss:$8 sps:$4 sm:$0xff]   ;;  %v1851_v16 = vld [vmem:[%s2910_s1 + $0x44] ss:$8 sps:$4 sm:$0xff]  }
   0x6   :  { %v1847_v13 = vld [vmem:[%s2910_s1 + $0x134] ss:$8 sps:$4 sm:$0xff]   ;;  %v1850_v15 = vld [vmem:[%s2910_s1 + $0x130] ss:$8 sps:$4 sm:$0xff]   ;;  %v1853_v17 = vld [vmem:[%s2910_s1 + $0x144] ss:$8 sps:$4 sm:$0xff]  }
   0x7   :  { %1022 = vmatpush1.bf16.msra.mxu1 %v1837_v6  ;;  %v1855_v18 = vld [vmem:[%s2910_s1 + $0x40] ss:$8 sps:$4 sm:$0xff]   ;;  %v1857_v20 = vld [vmem:[%s2910_s1 + $0x54] ss:$8 sps:$4 sm:$0xff]   ;;  %v1861_v22 = vld [vmem:[%s2910_s1 + $0x50] ss:$8 sps:$4 sm:$0xff]  }
   0x8   :  { %1175 = vmatpush1.bf16.msra.mxu0 %v1838_v7  ;;  %1023 = vmatprep.subr.bf16.mxu1 %v1839_v8  ;;  %v1856_v19 = vld [vmem:[%s2910_s1 + $0x140] ss:$8 sps:$4 sm:$0xff]   ;;  %v1859_v21 = vld [vmem:[%s2910_s1 + $0x154] ss:$8 sps:$4 sm:$0xff]   ;;  %v1862_v23 = vld [vmem:[%s2910_s1 + $0x150] ss:$8 sps:$4 sm:$0xff]  }
   0x9   :  { %1176 = vmatprep.subr.bf16.mxu0 %v1841_v9  ;;  %v1863_v24 = vld [vmem:[%s2910_s1 + $0x64] ss:$8 sps:$4 sm:$0xff]   ;;  %v1867_v26 = vld [vmem:[%s2910_s1 + $0x60] ss:$8 sps:$4 sm:$0xff]   ;;  %v1869_v28 = vld [vmem:[%s2910_s1 + $0x74] ss:$8 sps:$4 sm:$0xff]  }
   0xa   :  { %v1865_v25 = vld [vmem:[%s2910_s1 + $0x164] ss:$8 sps:$4 sm:$0xff]   ;;  %v1868_v27 = vld [vmem:[%s2910_s1 + $0x160] ss:$8 sps:$4 sm:$0xff]   ;;  %v1871_v29 = vld [vmem:[%s2910_s1 + $0x174] ss:$8 sps:$4 sm:$0xff]  }
   0xb   :  { %1024 = vmatpush1.bf16.msra.mxu1 %v1843_v10  ;;  %v1873_v30 = vld [vmem:[%s2910_s1 + $0x70] ss:$8 sps:$4 sm:$0xff]   ;;  %v1875_v32 = vld [vmem:[%s2910_s1 + $0x84] ss:$8 sps:$4 sm:$0xff]   ;;  %v1879_v34 = vld [vmem:[%s2910_s1 + $0x80] ss:$8 sps:$4 sm:$0xff]  }
   0xc   :  { %1177 = vmatpush1.bf16.msra.mxu0 %v1844_v11  ;;  %1025 = vmatprep.subr.bf16.mxu1 %v1845_v12  ;;  %v1874_v31 = vld [vmem:[%s2910_s1 + $0x170] ss:$8 sps:$4 sm:$0xff]   ;;  %v1877_v33 = vld [vmem:[%s2910_s1 + $0x184] ss:$8 sps:$4 sm:$0xff]   ;;  %v1880_v35 = vld [vmem:[%s2910_s1 + $0x180] ss:$8 sps:$4 sm:$0xff]  }
   0xd   :  { %1178 = vmatprep.subr.bf16.mxu0 %v1847_v13  ;;  %v1881_v36 = vld [vmem:[%s2910_s1 + $0x94] ss:$8 sps:$4 sm:$0xff]   ;;  %v1885_v38 = vld [vmem:[%s2910_s1 + $0x90] ss:$8 sps:$4 sm:$0xff]   ;;  %v1887_v40 = vld [vmem:[%s2910_s1 + $0xa4] ss:$8 sps:$4 sm:$0xff]  }
   0xe   :  { %v1883_v37 = vld [vmem:[%s2910_s1 + $0x194] ss:$8 sps:$4 sm:$0xff]   ;;  %v1886_v39 = vld [vmem:[%s2910_s1 + $0x190] ss:$8 sps:$4 sm:$0xff]   ;;  %v1889_v41 = vld [vmem:[%s2910_s1 + $0x1a4] ss:$8 sps:$4 sm:$0xff]  }
   0xf   :  { %1026 = vmatpush1.bf16.msra.mxu1 %v1849_v14  ;;  %v1891_v42 = vld [vmem:[%s2910_s1 + $0xa0] ss:$8 sps:$4 sm:$0xff]   ;;  %v1893_v44 = vld [vmem:[%s2910_s1 + $0xb4] ss:$8 sps:$4 sm:$0xff]   ;;  %v1897_v46 = vld [vmem:[%s2910_s1 + $0xb0] ss:$8 sps:$4 sm:$0xff]  }
  0x10   :  { %1179 = vmatpush1.bf16.msra.mxu0 %v1850_v15  ;;  %1027 = vmatprep.subr.bf16.mxu1 %v1851_v16  ;;  %v1892_v43 = vld [vmem:[%s2910_s1 + $0x1a0] ss:$8 sps:$4 sm:$0xff]   ;;  %v1895_v45 = vld [vmem:[%s2910_s1 + $0x1b4] ss:$8 sps:$4 sm:$0xff]   ;;  %v1898_v47 = vld [vmem:[%s2910_s1 + $0x1b0] ss:$8 sps:$4 sm:$0xff]  }
  0x11   :  { %1180 = vmatprep.subr.bf16.mxu0 %v1853_v17  ;;  %v1899_v48 = vld [vmem:[%s2910_s1 + $0xc4] ss:$8 sps:$4 sm:$0xff]   ;;  %v1903_v52 = vld [vmem:[%s2910_s1 + $0xc0] ss:$8 sps:$4 sm:$0xff]   ;;  %v1905_v54 = vld [vmem:[%s2910_s1 + $0xd4] ss:$8 sps:$4 sm:$0xff]  }
  0x12   :  { %v1925_v49 = vld [vmem:[%s2911_s0 + $0x4] ss:$24 sps:$4 sm:$0xff]   ;;  %v1904_v53 = vld [vmem:[%s2910_s1 + $0x1c0] ss:$8 sps:$4 sm:$0xff]   ;;  %v1909_v56 = vld [vmem:[%s2910_s1 + $0xd0] ss:$8 sps:$4 sm:$0xff]  }
  0x13   :  { %1028 = vmatpush1.bf16.msra.mxu1 %v1855_v18  ;;  %v1901_v50 = vld [vmem:[%s2910_s1 + $0x1c4] ss:$8 sps:$4 sm:$0xff]   ;;  %1051 = vmatprep.mubr.bf16.mxu1 %v1925_v49  ;;  %v1907_v55 = vld [vmem:[%s2910_s1 + $0x1d4] ss:$8 sps:$4 sm:$0xff]   ;;  %v1910_v57 = vld [vmem:[%s2910_s1 + $0x1d0] ss:$8 sps:$4 sm:$0xff]  }
  0x14   :  { %1181 = vmatpush1.bf16.msra.mxu0 %v1856_v19  ;;  %1029 = vmatprep.subr.bf16.mxu1 %v1857_v20  ;;  %v1928_v51 = vld [vmem:[%s2911_s0 + $0xc] ss:$24 sps:$4 sm:$0xff]   ;;  %v1915_v60 = vld [vmem:[%s2910_s1 + $0xe0] ss:$8 sps:$4 sm:$0xff]   ;;  %v1917_v62 = vld [vmem:[%s2910_s1 + $0xf4] ss:$8 sps:$4 sm:$0xff]  }
  0x15   :  { %1182 = vmatprep.subr.bf16.mxu0 %v1859_v21  ;;  %1204 = vmatprep.mubr.bf16.mxu0 %v1928_v51  ;;  %v1911_v58 = vld [vmem:[%s2910_s1 + $0xe4] ss:$8 sps:$4 sm:$0xff]   ;;  %v1916_v61 = vld [vmem:[%s2910_s1 + $0x1e0] ss:$8 sps:$4 sm:$0xff]   ;;  %v1919_v63 = vld [vmem:[%s2910_s1 + $0x1f4] ss:$8 sps:$4 sm:$0xff]  }
  0x16   :  { %v1913_v59 = vld [vmem:[%s2910_s1 + $0x1e4] ss:$8 sps:$4 sm:$0xff]   ;;  %v1921_v0 = vld [vmem:[%s2910_s1 + $0xf0] ss:$8 sps:$4 sm:$0xff]   ;;  %v1926_v4 = vld [vmem:[%s2911_s0 + $0x8] ss:$24 sps:$4 sm:$0xff]  }
  0x17   :  { %1030 = vmatpush1.bf16.msra.mxu1 %v1861_v22  ;;  %v1922_v1 = vld [vmem:[%s2910_s1 + $0x1f0] ss:$8 sps:$4 sm:$0xff]   ;;  %v1931_v2 = vld [vmem:[%s2910_s1 + $0x204] ss:$8 sps:$4 sm:$0xff]   ;;  %v1929_v5 = vld [vmem:[%s2910_s1 + $0x200] ss:$8 sps:$4 sm:$0xff]  }
  0x18   :  { %1183 = vmatpush1.bf16.msra.mxu0 %v1862_v23  ;;  %1031 = vmatprep.subr.bf16.mxu1 %v1863_v24  ;;  %v1923_v3 = vld [vmem:[%s2911_s0] ss:$24 sps:$4 sm:$0xff]   ;;  %v1934_v6 = vld [vmem:[%s2910_s1 + $0x214] ss:$8 sps:$4 sm:$0xff]   ;;  %v1943_v10 = vld [vmem:[%s2910_s1 + $0x224] ss:$8 sps:$4 sm:$0xff]  }
  0x19   :  { %1184 = vmatprep.subr.bf16.mxu0 %v1865_v25  ;;  %v1935_v7 = vld [vmem:[%s2911_s0 + $0x34] ss:$24 sps:$4 sm:$0xff]   ;;  %v1932_v9 = vld [vmem:[%s2910_s1 + $0x210] ss:$8 sps:$4 sm:$0xff]   ;;  %v1941_v13 = vld [vmem:[%s2910_s1 + $0x220] ss:$8 sps:$4 sm:$0xff]  }
  0x1a   :  { %v1937_v8 = vld [vmem:[%s2911_s0 + $0x3c] ss:$24 sps:$4 sm:$0xff]   ;;  %v1939_v11 = vld [vmem:[%s2911_s0 + $0x30] ss:$24 sps:$4 sm:$0xff]   ;;  %v1946_v15 = vld [vmem:[%s2911_s0 + $0x6c] ss:$24 sps:$4 sm:$0xff]  }
  0x1b   :  { %1032 = vmatpush1.bf16.msra.mxu1 %v1867_v26  ;;  %v1940_v12 = vld [vmem:[%s2911_s0 + $0x38] ss:$24 sps:$4 sm:$0xff]   ;;  %v1944_v14 = vld [vmem:[%s2911_s0 + $0x64] ss:$24 sps:$4 sm:$0xff]   ;;  %v1949_v20 = vld [vmem:[%s2911_s0 + $0x68] ss:$24 sps:$4 sm:$0xff]  }
  0x1c   :  { %1185 = vmatpush1.bf16.msra.mxu0 %v1868_v27  ;;  %1033 = vmatprep.subr.bf16.mxu1 %v1869_v28  ;;  %v1952_v16 = vld [vmem:[%s2910_s1 + $0x234] ss:$8 sps:$4 sm:$0xff]   ;;  %v1950_v17 = vld [vmem:[%s2910_s1 + $0x230] ss:$8 sps:$4 sm:$0xff]   ;;  %v1961_v18 = vld [vmem:[%s2910_s1 + $0x244] ss:$8 sps:$4 sm:$0xff]  }
  0x1d   :  { %1186 = vmatprep.subr.bf16.mxu0 %v1871_v29  ;;  %v1948_v19 = vld [vmem:[%s2911_s0 + $0x60] ss:$24 sps:$4 sm:$0xff]   ;;  %v1953_v21 = vld [vmem:[%s2911_s0 + $0x94] ss:$24 sps:$4 sm:$0xff]   ;;  %v1957_v26 = vld [vmem:[%s2911_s0 + $0x90] ss:$24 sps:$4 sm:$0xff]  }
  0x1e   :  { %v1955_v22 = vld [vmem:[%s2911_s0 + $0x9c] ss:$24 sps:$4 sm:$0xff]   ;;  %v1959_v23 = vld [vmem:[%s2910_s1 + $0x240] ss:$8 sps:$4 sm:$0xff]   ;;  %v1962_v25 = vld [vmem:[%s2910_s1 + $0x250] ss:$8 sps:$4 sm:$0xff]  }
  0x1f   :  { %1034 = vmatpush1.bf16.msra.mxu1 %v1873_v30  ;;  %v1964_v24 = vld [vmem:[%s2910_s1 + $0x254] ss:$8 sps:$4 sm:$0xff]   ;;  %v1973_v27 = vld [vmem:[%s2910_s1 + $0x264] ss:$8 sps:$4 sm:$0xff]   ;;  %v1958_v28 = vld [vmem:[%s2911_s0 + $0x98] ss:$24 sps:$4 sm:$0xff]  }
  0x20   :  { %1187 = vmatpush1.bf16.msra.mxu0 %v1874_v31  ;;  %1035 = vmatprep.subr.bf16.mxu1 %v1875_v32  ;;  %v1965_v29 = vld [vmem:[%s2911_s0 + $0xc4] ss:$24 sps:$4 sm:$0xff]   ;;  %v1971_v31 = vld [vmem:[%s2910_s1 + $0x260] ss:$8 sps:$4 sm:$0xff]   ;;  %v2010_v49 = vld [vmem:[%s2910_s1 + $0x2b0] ss:$8 sps:$4 sm:$0xff]  }
  0x21   :  { %1188 = vmatprep.subr.bf16.mxu0 %v1877_v33  ;;  %v1967_v30 = vld [vmem:[%s2911_s0 + $0xcc] ss:$24 sps:$4 sm:$0xff]   ;;  %v1982_v32 = vld [vmem:[%s2910_s1 + $0x274] ss:$8 sps:$4 sm:$0xff]   ;;  %v1980_v33 = vld [vmem:[%s2910_s1 + $0x270] ss:$8 sps:$4 sm:$0xff]  }
  0x22   :  { %v1987_v51 = vld [vmem:[%s2911_s0 + $0x120] ss:$24 sps:$4 sm:$0xff]  }
  0x23   :  { %1036 = vmatpush1.bf16.msra.mxu1 %v1879_v34  ;;  %v1969_v34 = vld [vmem:[%s2911_s0 + $0xc0] ss:$24 sps:$4 sm:$0xff]  }
  0x24   :  { %1189 = vmatpush1.bf16.msra.mxu0 %v1880_v35  ;;  %1037 = vmatprep.subr.bf16.mxu1 %v1881_v36  ;;  %v1991_v35 = vld [vmem:[%s2910_s1 + $0x284] ss:$8 sps:$4 sm:$0xff]   ;;  %v1970_v36 = vld [vmem:[%s2911_s0 + $0xc8] ss:$24 sps:$4 sm:$0xff]  }
  0x25   :  { %1190 = vmatprep.subr.bf16.mxu0 %v1883_v37  ;;  %v1974_v37 = vld [vmem:[%s2911_s0 + $0xf4] ss:$24 sps:$4 sm:$0xff]  }
  0x27   :  { %1038 = vmatpush1.bf16.msra.mxu1 %v1885_v38  ;;  %v1976_v38 = vld [vmem:[%s2911_s0 + $0xfc] ss:$24 sps:$4 sm:$0xff]  }
  0x28   :  { %1191 = vmatpush1.bf16.msra.mxu0 %v1886_v39  ;;  %1039 = vmatprep.subr.bf16.mxu1 %v1887_v40  ;;  %v1989_v39 = vld [vmem:[%s2910_s1 + $0x280] ss:$8 sps:$4 sm:$0xff]   ;;  %v1994_v40 = vld [vmem:[%s2910_s1 + $0x294] ss:$8 sps:$4 sm:$0xff]  }
  0x29   :  { %1192 = vmatprep.subr.bf16.mxu0 %v1889_v41  ;;  %v1992_v41 = vld [vmem:[%s2910_s1 + $0x290] ss:$8 sps:$4 sm:$0xff]  }
  0x2b   :  { %1040 = vmatpush1.bf16.msra.mxu1 %v1891_v42  ;;  %v2003_v42 = vld [vmem:[%s2910_s1 + $0x2a4] ss:$8 sps:$4 sm:$0xff]  }
  0x2c   :  { %1193 = vmatpush1.bf16.msra.mxu0 %v1892_v43  ;;  %1041 = vmatprep.subr.bf16.mxu1 %v1893_v44  ;;  %v1978_v43 = vld [vmem:[%s2911_s0 + $0xf0] ss:$24 sps:$4 sm:$0xff]  }
  0x2d   :  { %1194 = vmatprep.subr.bf16.mxu0 %v1895_v45  ;;  %v1979_v44 = vld [vmem:[%s2911_s0 + $0xf8] ss:$24 sps:$4 sm:$0xff]   ;;  %v1983_v45 = vld [vmem:[%s2911_s0 + $0x124] ss:$24 sps:$4 sm:$0xff]  }
  0x2f   :  { %1042 = vmatpush1.bf16.msra.mxu1 %v1897_v46  ;;  %v1985_v46 = vld [vmem:[%s2911_s0 + $0x12c] ss:$24 sps:$4 sm:$0xff]  }
  0x30   :  { %1195 = vmatpush1.bf16.msra.mxu0 %v1898_v47  ;;  %1043 = vmatprep.subr.bf16.mxu1 %v1899_v48  ;;  %v2001_v47 = vld [vmem:[%s2910_s1 + $0x2a0] ss:$8 sps:$4 sm:$0xff]   ;;  %v2012_v48 = vld [vmem:[%s2910_s1 + $0x2b4] ss:$8 sps:$4 sm:$0xff]  }
  0x31   :  { %1196 = vmatprep.subr.bf16.mxu0 %v1901_v50  ;;  %v2021_v50 = vld [vmem:[%s2910_s1 + $0x2c4] ss:$8 sps:$4 sm:$0xff]  }
  0x33   :  { %1044 = vmatpush1.bf16.msra.mxu1 %v1903_v52  ;;  %v1988_v52 = vld [vmem:[%s2911_s0 + $0x128] ss:$24 sps:$4 sm:$0xff]  }
  0x34   :  { %1197 = vmatpush1.bf16.msra.mxu0 %v1904_v53  ;;  %1045 = vmatprep.subr.bf16.mxu1 %v1905_v54  ;;  %v1995_v53 = vld [vmem:[%s2911_s0 + $0x154] ss:$24 sps:$4 sm:$0xff]  }
  0x35   :  { %1198 = vmatprep.subr.bf16.mxu0 %v1907_v55  ;;  %v1997_v54 = vld [vmem:[%s2911_s0 + $0x15c] ss:$24 sps:$4 sm:$0xff]   ;;  %v2019_v55 = vld [vmem:[%s2910_s1 + $0x2c0] ss:$8 sps:$4 sm:$0xff]  }
  0x37   :  { %1046 = vmatpush1.bf16.msra.mxu1 %v1909_v56  ;;  %v2024_v56 = vld [vmem:[%s2910_s1 + $0x2d4] ss:$8 sps:$4 sm:$0xff]  }
  0x38   :  { %1199 = vmatpush1.bf16.msra.mxu0 %v1910_v57  ;;  %1047 = vmatprep.subr.bf16.mxu1 %v1911_v58  ;;  %v2022_v57 = vld [vmem:[%s2910_s1 + $0x2d0] ss:$8 sps:$4 sm:$0xff]   ;;  %v2033_v58 = vld [vmem:[%s2910_s1 + $0x2e4] ss:$8 sps:$4 sm:$0xff]  }
  0x39   :  { %1200 = vmatprep.subr.bf16.mxu0 %v1913_v59  ;;  %v1999_v59 = vld [vmem:[%s2911_s0 + $0x150] ss:$24 sps:$4 sm:$0xff]  }
  0x3b   :  { %1048 = vmatpush1.bf16.msra.mxu1 %v1915_v60  ;;  %v2000_v60 = vld [vmem:[%s2911_s0 + $0x158] ss:$24 sps:$4 sm:$0xff]  }
  0x3c   :  { %1201 = vmatpush1.bf16.msra.mxu0 %v1916_v61  ;;  %1049 = vmatprep.subr.bf16.mxu1 %v1917_v62  ;;  %v2004_v61 = vld [vmem:[%s2911_s0 + $0x184] ss:$24 sps:$4 sm:$0xff]  }
  0x3d   :  { %1202 = vmatprep.subr.bf16.mxu0 %v1919_v63  ;;  %v2006_v62 = vld [vmem:[%s2911_s0 + $0x18c] ss:$24 sps:$4 sm:$0xff]   ;;  %v2031_v63 = vld [vmem:[%s2910_s1 + $0x2e0] ss:$8 sps:$4 sm:$0xff]  }
  0x3f   :  { %1050 = vmatpush1.bf16.msra.mxu1 %v1921_v0  ;;  %v2042_v0 = vld [vmem:[%s2910_s1 + $0x2f4] ss:$8 sps:$4 sm:$0xff]  }
  0x40   :  { %1203 = vmatpush1.bf16.msra.mxu0 %v1922_v1  ;;  %1699 = vmatprep.subr.bf16.mxu1 %v1931_v2  ;;  %v2040_v1 = vld [vmem:[%s2910_s1 + $0x2f0] ss:$8 sps:$4 sm:$0xff]  }
  0x41   :  { %1325 = vmatprep.subr.bf16.mxu0 %v1931_v2  ;;  %v2008_v2 = vld [vmem:[%s2911_s0 + $0x180] ss:$24 sps:$4 sm:$0xff]  }
  0x42   :  { %1052 = vmatmul.mubr.bf16.vlgmr.msra.gmra.mrb[0].mxu1 %v1923_v3  ;;  %v2009_v3 = vld [vmem:[%s2911_s0 + $0x188] ss:$24 sps:$4 sm:$0xff]  }
  0x43   :  { %1205 = vmatmul.mubr.bf16.vlgmr.msra.gmra.mrb[0].mxu0 %v1926_v4  ;;  %1715 = vmatpush1.bf16.msra.mxu1 %v1929_v5  ;;  %v2013_v4 = vld [vmem:[%s2911_s0 + $0x1b4] ss:$24 sps:$4 sm:$0xff]  }
  0x44   :  { %1326 = vmatpush1.bf16.msra.mxu0 %v1929_v5  ;;  %1700 = vmatprep.subr.bf16.mxu1 %v1934_v6  ;;  %v2015_v5 = vld [vmem:[%s2911_s0 + $0x1bc] ss:$24 sps:$4 sm:$0xff]  }
  0x45   :  { %1327 = vmatprep.subr.bf16.mxu0 %v1934_v6  ;;  %1061 = vmatprep.mubr.bf16.mxu1 %v1935_v7  ;;  %v2017_v6 = vld [vmem:[%s2911_s0 + $0x1b0] ss:$24 sps:$4 sm:$0xff]  }
  0x46   :  { %1214 = vmatprep.mubr.bf16.mxu0 %v1937_v8  ;;  %v2018_v7 = vld [vmem:[%s2911_s0 + $0x1b8] ss:$24 sps:$4 sm:$0xff]   ;;  %v2025_v8 = vld [vmem:[%s2911_s0 + $0x1e4] ss:$24 sps:$4 sm:$0xff]  }
  0x47   :  { %1716 = vmatpush1.bf16.msra.mxu1 %v1932_v9 }
  0x48   :  { %1328 = vmatpush1.bf16.msra.mxu0 %v1932_v9  ;;  %1701 = vmatprep.subr.bf16.mxu1 %v1943_v10  ;;  %v2027_v9 = vld [vmem:[%s2911_s0 + $0x1ec] ss:$24 sps:$4 sm:$0xff]  }
  0x49   :  { %1329 = vmatprep.subr.bf16.mxu0 %v1943_v10  ;;  %v2029_v10 = vld [vmem:[%s2911_s0 + $0x1e0] ss:$24 sps:$4 sm:$0xff]  }
  0x4a   :  { %1062 = vmatmul.mubr.bf16.gmra.mrb[4].mxu1 %v1939_v11  ;;  %v2030_v11 = vld [vmem:[%s2911_s0 + $0x1e8] ss:$24 sps:$4 sm:$0xff]  }
  0x4b   :  { %1215 = vmatmul.mubr.bf16.gmra.mrb[4].mxu0 %v1940_v12  ;;  %1717 = vmatpush1.bf16.msra.mxu1 %v1941_v13  ;;  %v2034_v12 = vld [vmem:[%s2911_s0 + $0x214] ss:$24 sps:$4 sm:$0xff]  }
  0x4c   :  { %1330 = vmatpush1.bf16.msra.mxu0 %v1941_v13  ;;  %1071 = vmatprep.mubr.bf16.mxu1 %v1944_v14  ;;  %v2036_v13 = vld [vmem:[%s2911_s0 + $0x21c] ss:$24 sps:$4 sm:$0xff]   ;;  %v2038_v14 = vld [vmem:[%s2911_s0 + $0x210] ss:$24 sps:$4 sm:$0xff]  }
  0x4d   :  { %1224 = vmatprep.mubr.bf16.mxu0 %v1946_v15  ;;  %1331 = vmatprep.subr.bf16.mxu0 %v1952_v16  ;;  %v2039_v15 = vld [vmem:[%s2911_s0 + $0x218] ss:$24 sps:$4 sm:$0xff]  }
  0x4e   :  { %1702 = vmatprep.subr.bf16.mxu1 %v1952_v16  ;;  %v2045_v16 = vld [vmem:[%s2911_s0 + $0x14] ss:$24 sps:$4 sm:$0xff]  }
  0x4f   :  { %1718 = vmatpush1.bf16.msra.mxu1 %v1950_v17 }
  0x50   :  { %1332 = vmatpush1.bf16.msra.mxu0 %v1950_v17  ;;  %1703 = vmatprep.subr.bf16.mxu1 %v1961_v18  ;;  %v2048_v17 = vld [vmem:[%s2911_s0 + $0x134] ss:$24 sps:$4 sm:$0xff]  }
  0x51   :  { %1333 = vmatprep.subr.bf16.mxu0 %v1961_v18  ;;  %v2043_v18 = vld [vmem:[%s2911_s0 + $0x10] ss:$24 sps:$4 sm:$0xff]  }
  0x52   :  { %1072 = vmatmul.mubr.bf16.gmra.mrb[8].mxu1 %v1948_v19  ;;  %v2046_v19 = vld [vmem:[%s2911_s0 + $0x130] ss:$24 sps:$4 sm:$0xff]  }
  0x53   :  { %1225 = vmatmul.mubr.bf16.gmra.mrb[8].mxu0 %v1949_v20  ;;  %1081 = vmatprep.mubr.bf16.mxu1 %v1953_v21  ;;  %v2049_v20 = vld [vmem:[%s2911_s0 + $0x44] ss:$24 sps:$4 sm:$0xff]  }
  0x54   :  { %1234 = vmatprep.mubr.bf16.mxu0 %v1955_v22  ;;  %1334 = vmatpush1.bf16.msra.mxu0 %v1959_v23  ;;  %v2051_v21 = vld [vmem:[%s2911_s0 + $0x164] ss:$24 sps:$4 sm:$0xff]   ;;  %v2053_v22 = vld [vmem:[%s2911_s0 + $0x40] ss:$24 sps:$4 sm:$0xff]  }
  0x55   :  { %1719 = vmatpush1.bf16.msra.mxu1 %v1959_v23  ;;  %1335 = vmatprep.subr.bf16.mxu0 %v1964_v24  ;;  %v2054_v23 = vld [vmem:[%s2911_s0 + $0x160] ss:$24 sps:$4 sm:$0xff]  }
  0x56   :  { %1704 = vmatprep.subr.bf16.mxu1 %v1964_v24  ;;  %v2055_v24 = vld [vmem:[%s2911_s0 + $0x74] ss:$24 sps:$4 sm:$0xff]  }
  0x58   :  { %1336 = vmatpush1.bf16.msra.mxu0 %v1962_v25 }
  0x59   :  { %1720 = vmatpush1.bf16.msra.mxu1 %v1962_v25  ;;  %1337 = vmatprep.subr.bf16.mxu0 %v1973_v27  ;;  %v2057_v25 = vld [vmem:[%s2911_s0 + $0x194] ss:$24 sps:$4 sm:$0xff]  }
  0x5a   :  { %1705 = vmatprep.subr.bf16.mxu1 %v1973_v27  ;;  %1082 = vmatmul.mubr.bf16.gmra.mrb[12].mxu1 %v1957_v26  ;;  %v2059_v26 = vld [vmem:[%s2911_s0 + $0x70] ss:$24 sps:$4 sm:$0xff]  }
  0x5b   :  { %1235 = vmatmul.mubr.bf16.gmra.mrb[12].mxu0 %v1958_v28  ;;  %1091 = vmatprep.mubr.bf16.mxu1 %v1965_v29  ;;  %v2060_v27 = vld [vmem:[%s2911_s0 + $0x190] ss:$24 sps:$4 sm:$0xff]   ;;  %v2061_v28 = vld [vmem:[%s2911_s0 + $0xa4] ss:$24 sps:$4 sm:$0xff]  }
  0x5c   :  { %1244 = vmatprep.mubr.bf16.mxu0 %v1967_v30  ;;  %1338 = vmatpush1.bf16.msra.mxu0 %v1971_v31  ;;  %v2063_v29 = vld [vmem:[%s2911_s0 + $0x1c4] ss:$24 sps:$4 sm:$0xff]   ;;  %v2065_v30 = vld [vmem:[%s2911_s0 + $0xa0] ss:$24 sps:$4 sm:$0xff]  }
  0x5d   :  { %1721 = vmatpush1.bf16.msra.mxu1 %v1971_v31  ;;  %1339 = vmatprep.subr.bf16.mxu0 %v1982_v32  ;;  %v2066_v31 = vld [vmem:[%s2911_s0 + $0x1c0] ss:$24 sps:$4 sm:$0xff]  }
  0x5e   :  { %1706 = vmatprep.subr.bf16.mxu1 %v1982_v32  ;;  %v2067_v32 = vld [vmem:[%s2911_s0 + $0xd4] ss:$24 sps:$4 sm:$0xff]  }
  0x60   :  { %1340 = vmatpush1.bf16.msra.mxu0 %v1980_v33 }
  0x61   :  { %1722 = vmatpush1.bf16.msra.mxu1 %v1980_v33  ;;  %1341 = vmatprep.subr.bf16.mxu0 %v1991_v35  ;;  %v2069_v33 = vld [vmem:[%s2911_s0 + $0x1f4] ss:$24 sps:$4 sm:$0xff]  }
  0x62   :  { %1707 = vmatprep.subr.bf16.mxu1 %v1991_v35  ;;  %1092 = vmatmul.mubr.bf16.gmra.mrb[16].mxu1 %v1969_v34  ;;  %v2071_v34 = vld [vmem:[%s2911_s0 + $0xd0] ss:$24 sps:$4 sm:$0xff]  }
  0x63   :  { %1245 = vmatmul.mubr.bf16.gmra.mrb[16].mxu0 %v1970_v36  ;;  %1101 = vmatprep.mubr.bf16.mxu1 %v1974_v37  ;;  %v2072_v35 = vld [vmem:[%s2911_s0 + $0x1f0] ss:$24 sps:$4 sm:$0xff]   ;;  %v2073_v36 = vld [vmem:[%s2911_s0 + $0x104] ss:$24 sps:$4 sm:$0xff]  }
  0x64   :  { %1254 = vmatprep.mubr.bf16.mxu0 %v1976_v38  ;;  %1342 = vmatpush1.bf16.msra.mxu0 %v1989_v39  ;;  %v2075_v37 = vld [vmem:[%s2911_s0 + $0x224] ss:$24 sps:$4 sm:$0xff]   ;;  %v2077_v38 = vld [vmem:[%s2911_s0 + $0x100] ss:$24 sps:$4 sm:$0xff]  }
  0x65   :  { %1723 = vmatpush1.bf16.msra.mxu1 %v1989_v39  ;;  %1343 = vmatprep.subr.bf16.mxu0 %v1994_v40  ;;  %v2078_v39 = vld [vmem:[%s2911_s0 + $0x220] ss:$24 sps:$4 sm:$0xff]  }
  0x66   :  { %1708 = vmatprep.subr.bf16.mxu1 %v1994_v40 }
  0x68   :  { %1344 = vmatpush1.bf16.msra.mxu0 %v1992_v41 }
  0x69   :  { %1724 = vmatpush1.bf16.msra.mxu1 %v1992_v41  ;;  %1345 = vmatprep.subr.bf16.mxu0 %v2003_v42 }
  0x6a   :  { %1709 = vmatprep.subr.bf16.mxu1 %v2003_v42  ;;  %1102 = vmatmul.mubr.bf16.gmra.mrb[20].mxu1 %v1978_v43 }
  0x6b   :  { %1255 = vmatmul.mubr.bf16.gmra.mrb[20].mxu0 %v1979_v44  ;;  %1111 = vmatprep.mubr.bf16.mxu1 %v1983_v45 }
  0x6c   :  { %1264 = vmatprep.mubr.bf16.mxu0 %v1985_v46  ;;  %1346 = vmatpush1.bf16.msra.mxu0 %v2001_v47 }
  0x6d   :  { %1725 = vmatpush1.bf16.msra.mxu1 %v2001_v47  ;;  %1347 = vmatprep.subr.bf16.mxu0 %v2012_v48 }
  0x6e   :  { %1710 = vmatprep.subr.bf16.mxu1 %v2012_v48 }
  0x70   :  { %1348 = vmatpush1.bf16.msra.mxu0 %v2010_v49 }
  0x71   :  { %1726 = vmatpush1.bf16.msra.mxu1 %v2010_v49  ;;  %1349 = vmatprep.subr.bf16.mxu0 %v2021_v50 }
  0x72   :  { %1711 = vmatprep.subr.bf16.mxu1 %v2021_v50  ;;  %1112 = vmatmul.mubr.bf16.gmra.mrb[24].mxu1 %v1987_v51 }
  0x73   :  { %1265 = vmatmul.mubr.bf16.gmra.mrb[24].mxu0 %v1988_v52  ;;  %1121 = vmatprep.mubr.bf16.mxu1 %v1995_v53 }
  0x74   :  { %1274 = vmatprep.mubr.bf16.mxu0 %v1997_v54  ;;  %1350 = vmatpush1.bf16.msra.mxu0 %v2019_v55 }
  0x75   :  { %1727 = vmatpush1.bf16.msra.mxu1 %v2019_v55  ;;  %1351 = vmatprep.subr.bf16.mxu0 %v2024_v56 }
  0x76   :  { %1712 = vmatprep.subr.bf16.mxu1 %v2024_v56 }
  0x78   :  { %1352 = vmatpush1.bf16.msra.mxu0 %v2022_v57 }
  0x79   :  { %1728 = vmatpush1.bf16.msra.mxu1 %v2022_v57  ;;  %1353 = vmatprep.subr.bf16.mxu0 %v2033_v58 }
  0x7a   :  { %1713 = vmatprep.subr.bf16.mxu1 %v2033_v58  ;;  %1122 = vmatmul.mubr.bf16.gmra.mrb[28].mxu1 %v1999_v59 }
  0x7b   :  { %1275 = vmatmul.mubr.bf16.gmra.mrb[28].mxu0 %v2000_v60  ;;  %1131 = vmatprep.mubr.bf16.mxu1 %v2004_v61 }
  0x7c   :  { %1284 = vmatprep.mubr.bf16.mxu0 %v2006_v62  ;;  %1354 = vmatpush1.bf16.msra.mxu0 %v2031_v63 }
  0x7d   :  { %1729 = vmatpush1.bf16.msra.mxu1 %v2031_v63  ;;  %1355 = vmatprep.subr.bf16.mxu0 %v2042_v0 }
  0x7e   :  { %1714 = vmatprep.subr.bf16.mxu1 %v2042_v0 }
  0x80   :  { %1356 = vmatpush1.bf16.msra.mxu0 %v2040_v1 }
  0x81   :  { %1730 = vmatpush1.bf16.msra.mxu1 %v2040_v1 }
  0x82   :  { %1132 = vmatmul.mubr.bf16.gmra.mrb[32].mxu1 %v2008_v2 }
  0x83   :  { %1285 = vmatmul.mubr.bf16.gmra.mrb[32].mxu0 %v2009_v3  ;;  %1141 = vmatprep.mubr.bf16.mxu1 %v2013_v4 }
  0x84   :  { %1294 = vmatprep.mubr.bf16.mxu0 %v2015_v5 }
  0x8a   :  { %1142 = vmatmul.mubr.bf16.gmra.mrb[36].mxu1 %v2017_v6 }
  0x8b   :  { %1295 = vmatmul.mubr.bf16.gmra.mrb[36].mxu0 %v2018_v7  ;;  %1151 = vmatprep.mubr.bf16.mxu1 %v2025_v8 }
  0x8c   :  { %1304 = vmatprep.mubr.bf16.mxu0 %v2027_v9 }
  0x92   :  { %1152 = vmatmul.mubr.bf16.gmra.mrb[40].mxu1 %v2029_v10 }
  0x93   :  { %1305 = vmatmul.mubr.bf16.gmra.mrb[40].mxu0 %v2030_v11  ;;  %1161 = vmatprep.mubr.bf16.mxu1 %v2034_v12 }
  0x94   :  { %1314 = vmatprep.mubr.bf16.mxu0 %v2036_v13 }
  0x9a   :  { %1162 = vmatmul.mubr.bf16.gmra.mrb[44].mxu1 %v2038_v14 }
  0x9b   :  { %1315 = vmatmul.mubr.bf16.gmra.mrb[44].mxu0 %v2039_v15  ;;  %1417 = vmatprep.mubr.bf16.mxu1 %v2048_v17 }
  0x9c   :  { %1357 = vmatprep.mubr.bf16.mxu0 %v2045_v16 }
  0xa2   :  { %1418 = vmatmul.mubr.bf16.vlgmr.msra.gmra.mrb[48].mxu1 %v2046_v19 }
  0xa3   :  { %1358 = vmatmul.mubr.bf16.vlgmr.msra.gmra.mrb[0].mxu0 %v2043_v18  ;;  %1427 = vmatprep.mubr.bf16.mxu1 %v2051_v21 }
  0xa4   :  { %1367 = vmatprep.mubr.bf16.mxu0 %v2049_v20 }
  0xaa   :  { %1428 = vmatmul.mubr.bf16.gmra.mrb[52].mxu1 %v2054_v23 }
  0xab   :  { %1368 = vmatmul.mubr.bf16.gmra.mrb[4].mxu0 %v2053_v22  ;;  %1437 = vmatprep.mubr.bf16.mxu1 %v2057_v25 }
  0xac   :  { %1377 = vmatprep.mubr.bf16.mxu0 %v2055_v24 }
  0xb2   :  { %1438 = vmatmul.mubr.bf16.gmra.mrb[56].mxu1 %v2060_v27 }
  0xb3   :  { %1378 = vmatmul.mubr.bf16.gmra.mrb[8].mxu0 %v2059_v26  ;;  %1447 = vmatprep.mubr.bf16.mxu1 %v2063_v29 }
  0xb4   :  { %1387 = vmatprep.mubr.bf16.mxu0 %v2061_v28 }
  0xba   :  { %1448 = vmatmul.mubr.bf16.gmra.mrb[60].mxu1 %v2066_v31 }
  0xbb   :  { %1388 = vmatmul.mubr.bf16.gmra.mrb[12].mxu0 %v2065_v30  ;;  %1457 = vmatprep.mubr.bf16.mxu1 %v2069_v33 }
  0xbc   :  { %1397 = vmatprep.mubr.bf16.mxu0 %v2067_v32 }
  0xc2   :  { %1458 = vmatmul.mubr.bf16.gmra.mrb[64].mxu1 %v2072_v35 }
  0xc3   :  { %1398 = vmatmul.mubr.bf16.gmra.mrb[16].mxu0 %v2071_v34  ;;  %1467 = vmatprep.mubr.bf16.mxu1 %v2075_v37 }
  0xc4   :  { %1407 = vmatprep.mubr.bf16.mxu0 %v2073_v36 }
  0xca   :  { %1468 = vmatmul.mubr.bf16.gmra.mrb[68].mxu1 %v2078_v39 }
  0xcb   :  { %1408 = vmatmul.mubr.bf16.gmra.mrb[20].mxu0 %v2077_v38 }
 0x115   :  { %v2598_v40 = vpop.f32.mrb[0].mxu1 }
 0x116   :  { %v2600_v41 = vpop.f32.mrb[1].mxu1 }
 0x117   :  { %v2602_v42 = vpop.f32.mrb[2].mxu1 }
 0x118   :  { %v2604_v43 = vpop.f32.mrb[3].mxu1 }
 0x11d   :  { %v2606_v44 = vpop.f32.mrb[4].mxu1 }
 0x11e   :  { %v2608_v45 = vpop.f32.mrb[5].mxu1 }
 0x11f   :  { %v2610_v46 = vpop.f32.mrb[6].mxu1 }
 0x120   :  { %v2612_v47 = vpop.f32.mrb[7].mxu1 }
 0x125   :  { %v2614_v48 = vpop.f32.mrb[8].mxu1 }
 0x126   :  { %v2616_v49 = vpop.f32.mrb[9].mxu1 }
 0x127   :  { %v2618_v50 = vpop.f32.mrb[10].mxu1 }
 0x128   :  { %v2620_v51 = vpop.f32.mrb[11].mxu1 }
 0x12d   :  { %v2622_v52 = vpop.f32.mrb[12].mxu1 }
 0x12e   :  { %v2624_v53 = vpop.f32.mrb[13].mxu1 }
 0x12f   :  { %v2626_v54 = vpop.f32.mrb[14].mxu1 }
 0x130   :  { %v2628_v55 = vpop.f32.mrb[15].mxu1 }
 0x135   :  { %v2630_v56 = vpop.f32.mrb[16].mxu1 }
 0x136   :  { %v2632_v57 = vpop.f32.mrb[17].mxu1 }
 0x137   :  { %v2634_v58 = vpop.f32.mrb[18].mxu1 }
 0x138   :  { %v2636_v59 = vpop.f32.mrb[19].mxu1 }
 0x13d   :  { %v2638_v60 = vpop.f32.mrb[20].mxu1 }
 0x13e   :  { %v2640_v61 = vpop.f32.mrb[21].mxu1 }
 0x13f   :  { %v2642_v62 = vpop.f32.mrb[22].mxu1 }
 0x140   :  { %v2644_v63 = vpop.f32.mrb[23].mxu1 }
 0x145   :  { %v1113_v0 = vpop.f32.mrb[24].mxu1 }
 0x146   :  { %v1266_v1 = vpop.f32.mrb[24].mxu0  ;;  %v1115_v3 = vpop.f32.mrb[25].mxu1 }
 0x147   :  { %v2646_v2 = vadd.f32 %v1266_v1, %v1113_v0  ;;  %v1268_v4 = vpop.f32.mrb[25].mxu0  ;;  %v1117_v6 = vpop.f32.mrb[26].mxu1 }
 0x148   :  { %v2648_v5 = vadd.f32 %v1268_v4, %v1115_v3  ;;  %v1270_v7 = vpop.f32.mrb[26].mxu0  ;;  %v1119_v9 = vpop.f32.mrb[27].mxu1 }
 0x149   :  { %v2650_v8 = vadd.f32 %v1270_v7, %v1117_v6  ;;  %v1272_v10 = vpop.f32.mrb[27].mxu0 }
 0x14a   :  { %v2652_v11 = vadd.f32 %v1272_v10, %v1119_v9 }
 0x14d   :  { %v1123_v12 = vpop.f32.mrb[28].mxu1 }
 0x14e   :  { %v1276_v13 = vpop.f32.mrb[28].mxu0  ;;  %v1125_v15 = vpop.f32.mrb[29].mxu1 }
 0x14f   :  { %v2654_v14 = vadd.f32 %v1276_v13, %v1123_v12  ;;  %v1278_v16 = vpop.f32.mrb[29].mxu0  ;;  %v1127_v18 = vpop.f32.mrb[30].mxu1 }
 0x150   :  { %v2656_v17 = vadd.f32 %v1278_v16, %v1125_v15  ;;  %v1280_v19 = vpop.f32.mrb[30].mxu0  ;;  %v1129_v21 = vpop.f32.mrb[31].mxu1 }
 0x151   :  { %v2658_v20 = vadd.f32 %v1280_v19, %v1127_v18  ;;  %v1282_v22 = vpop.f32.mrb[31].mxu0 }
 0x152   :  { %v2660_v23 = vadd.f32 %v1282_v22, %v1129_v21 }
 0x155   :  { %v1133_v24 = vpop.f32.mrb[32].mxu1 }
 0x156   :  { %v1286_v25 = vpop.f32.mrb[32].mxu0  ;;  %v1135_v27 = vpop.f32.mrb[33].mxu1 }
 0x157   :  { %v2662_v26 = vadd.f32 %v1286_v25, %v1133_v24  ;;  %v1288_v28 = vpop.f32.mrb[33].mxu0  ;;  %v1137_v30 = vpop.f32.mrb[34].mxu1 }
 0x158   :  { %v2664_v29 = vadd.f32 %v1288_v28, %v1135_v27  ;;  %v1290_v31 = vpop.f32.mrb[34].mxu0  ;;  %v1139_v33 = vpop.f32.mrb[35].mxu1 }
 0x159   :  { %v2666_v32 = vadd.f32 %v1290_v31, %v1137_v30  ;;  %v1292_v34 = vpop.f32.mrb[35].mxu0 }
 0x15a   :  { %v2668_v35 = vadd.f32 %v1292_v34, %v1139_v33 }
 0x15d   :  { %v1143_v36 = vpop.f32.mrb[36].mxu1 }
 0x15e   :  { %v1296_v37 = vpop.f32.mrb[36].mxu0  ;;  %v1145_v39 = vpop.f32.mrb[37].mxu1 }
 0x15f   :  { %v2670_v38 = vadd.f32 %v1296_v37, %v1143_v36  ;;  %v1298_v0 = vpop.f32.mrb[37].mxu0  ;;  %v1147_v3 = vpop.f32.mrb[38].mxu1 }
 0x160   :  { %v2672_v1 = vadd.f32 %v1298_v0, %v1145_v39  ;;  %v1300_v4 = vpop.f32.mrb[38].mxu0  ;;  %v1149_v7 = vpop.f32.mrb[39].mxu1 }
 0x161   :  { %v2674_v6 = vadd.f32 %v1300_v4, %v1147_v3  ;;  %v1302_v9 = vpop.f32.mrb[39].mxu0 }
 0x162   :  { %v2676_v10 = vadd.f32 %v1302_v9, %v1149_v7 }
 0x165   :  { %v1153_v12 = vpop.f32.mrb[40].mxu1 }
 0x166   :  { %v1306_v13 = vpop.f32.mrb[40].mxu0  ;;  %v1155_v16 = vpop.f32.mrb[41].mxu1 }
 0x167   :  { %v2678_v15 = vadd.f32 %v1306_v13, %v1153_v12  ;;  %v1308_v18 = vpop.f32.mrb[41].mxu0  ;;  %v1157_v21 = vpop.f32.mrb[42].mxu1 }
 0x168   :  { %v2680_v19 = vadd.f32 %v1308_v18, %v1155_v16  ;;  %v1310_v22 = vpop.f32.mrb[42].mxu0  ;;  %v1159_v25 = vpop.f32.mrb[43].mxu1 }
 0x169   :  { %v2682_v24 = vadd.f32 %v1310_v22, %v1157_v21  ;;  %v1312_v27 = vpop.f32.mrb[43].mxu0 }
 0x16a   :  { %v2684_v28 = vadd.f32 %v1312_v27, %v1159_v25 }
 0x16d   :  { %v1163_v30 = vpop.f32.mrb[44].mxu1 }
 0x16e   :  { %v1316_v31 = vpop.f32.mrb[44].mxu0  ;;  %v1165_v34 = vpop.f32.mrb[45].mxu1 }
 0x16f   :  { %v2686_v33 = vadd.f32 %v1316_v31, %v1163_v30  ;;  %v1318_v36 = vpop.f32.mrb[45].mxu0  ;;  %v1167_v39 = vpop.f32.mrb[46].mxu1 }
 0x170   :  { %v2688_v37 = vadd.f32 %v1318_v36, %v1165_v34  ;;  %v1320_v0 = vpop.f32.mrb[46].mxu0  ;;  %v1169_v4 = vpop.f32.mrb[47].mxu1 }
 0x171   :  { %v2690_v3 = vadd.f32 %v1320_v0, %v1167_v39  ;;  %v1322_v7 = vpop.f32.mrb[47].mxu0 }
 0x172   :  { %v2692_v9 = vadd.f32 %v1322_v7, %v1169_v4 }
 0x175   :  { %v1419_v13 = vpop.f32.mrb[48].mxu1 }
 0x176   :  { %v1359_v12 = vpop.f32.mrb[0].mxu0  ;;  %v1420_v18 = vadd.f32 %v1419_v13, %v2646_v2  ;;  %v1421_v22 = vpop.f32.mrb[49].mxu1 }
 0x177   :  { %v1731_v16 = vadd.f32 %v1359_v12, %v2598_v40  ;;  %v1361_v21 = vpop.f32.mrb[1].mxu0  ;;  %v1422_v27 = vadd.f32 %v1421_v22, %v2648_v5  ;;  %v1423_v31 = vpop.f32.mrb[50].mxu1 }
 0x178   :  { %v1732_v25 = vadd.f32 %v1361_v21, %v2600_v41  ;;  %v1363_v30 = vpop.f32.mrb[2].mxu0  ;;  %1503 = vst [vmem:[%s2912_s2 + $0xc0] sm:$0xff] %v1420_v18  ;;  %v1424_v2 = vadd.f32 %v1423_v31, %v2650_v8  ;;  %v1425_v36 = vpop.f32.mrb[51].mxu1 }
 0x179   :  { %1478 = vst [vmem:[%s2912_s2] sm:$0xff] %v1731_v16  ;;  %v1733_v40 = vadd.f32 %v1363_v30, %v2602_v42  ;;  %v1365_v34 = vpop.f32.mrb[3].mxu0  ;;  %1504 = vst.msk [vmem:[%s2912_s2 + $0xc8] sm:$0xff] %vm1479_vm0, %v1422_v27  ;;  %v1426_v5 = vadd.f32 %v1425_v36, %v2652_v11 }
 0x17a   :  { %1480 = vst.msk [vmem:[%s2912_s2 + $0x8] sm:$0xff] %vm1479_vm0, %v1732_v25  ;;  %v1734_v41 = vadd.f32 %v1365_v34, %v2604_v43  ;;  %1505 = vst [vmem:[%s2912_s2 + $0xd0] sm:$0xff] %v1424_v2 }
 0x17b   :  { %1481 = vst [vmem:[%s2912_s2 + $0x10] sm:$0xff] %v1733_v40  ;;  %1506 = vst.msk [vmem:[%s2912_s2 + $0xd8] sm:$0xff] %vm1479_vm0, %v1426_v5 }
 0x17c   :  { %1482 = vst.msk [vmem:[%s2912_s2 + $0x18] sm:$0xff] %vm1479_vm0, %v1734_v41 }
 0x17d   :  { %v1429_v43 = vpop.f32.mrb[52].mxu1 }
 0x17e   :  { %v1369_v42 = vpop.f32.mrb[4].mxu0  ;;  %v1430_v11 = vadd.f32 %v1429_v43, %v2654_v14  ;;  %v1431_v0 = vpop.f32.mrb[53].mxu1 }
 0x17f   :  { %v1735_v8 = vadd.f32 %v1369_v42, %v2606_v44  ;;  %v1371_v39 = vpop.f32.mrb[5].mxu0  ;;  %v1432_v7 = vadd.f32 %v1431_v0, %v2656_v17  ;;  %v1433_v13 = vpop.f32.mrb[54].mxu1 }
 0x180   :  { %v1736_v4 = vadd.f32 %v1371_v39, %v2608_v45  ;;  %v1373_v12 = vpop.f32.mrb[6].mxu0  ;;  %1507 = vst [vmem:[%s2912_s2 + $0xe0] sm:$0xff] %v1430_v11  ;;  %v1434_v14 = vadd.f32 %v1433_v13, %v2658_v20  ;;  %v1435_v18 = vpop.f32.mrb[55].mxu1 }
 0x181   :  { %1483 = vst [vmem:[%s2912_s2 + $0x20] sm:$0xff] %v1735_v8  ;;  %v1737_v44 = vadd.f32 %v1373_v12, %v2610_v46  ;;  %v1375_v16 = vpop.f32.mrb[7].mxu0  ;;  %1508 = vst.msk [vmem:[%s2912_s2 + $0xe8] sm:$0xff] %vm1479_vm0, %v1432_v7  ;;  %v1436_v17 = vadd.f32 %v1435_v18, %v2660_v23 }
 0x182   :  { %1484 = vst.msk [vmem:[%s2912_s2 + $0x28] sm:$0xff] %vm1479_vm0, %v1736_v4  ;;  %v1738_v45 = vadd.f32 %v1375_v16, %v2612_v47  ;;  %1509 = vst [vmem:[%s2912_s2 + $0xf0] sm:$0xff] %v1434_v14 }
 0x183   :  { %1485 = vst [vmem:[%s2912_s2 + $0x30] sm:$0xff] %v1737_v44  ;;  %1510 = vst.msk [vmem:[%s2912_s2 + $0xf8] sm:$0xff] %vm1479_vm0, %v1436_v17 }
 0x184   :  { %1486 = vst.msk [vmem:[%s2912_s2 + $0x38] sm:$0xff] %vm1479_vm0, %v1738_v45 }
 0x185   :  { %v1439_v47 = vpop.f32.mrb[56].mxu1 }
 0x186   :  { %v1379_v46 = vpop.f32.mrb[8].mxu0  ;;  %v1440_v23 = vadd.f32 %v1439_v47, %v2662_v26  ;;  %v1441_v22 = vpop.f32.mrb[57].mxu1 }
 0x187   :  { %v1739_v20 = vadd.f32 %v1379_v46, %v2614_v48  ;;  %v1381_v21 = vpop.f32.mrb[9].mxu0  ;;  %v1442_v27 = vadd.f32 %v1441_v22, %v2664_v29  ;;  %v1443_v31 = vpop.f32.mrb[58].mxu1 }
 0x188   :  { %v1740_v25 = vadd.f32 %v1381_v21, %v2616_v49  ;;  %v1383_v30 = vpop.f32.mrb[10].mxu0  ;;  %1511 = vst [vmem:[%s2912_s2 + $0x100] sm:$0xff] %v1440_v23  ;;  %v1444_v26 = vadd.f32 %v1443_v31, %v2666_v32  ;;  %v1445_v2 = vpop.f32.mrb[59].mxu1 }
 0x189   :  { %1487 = vst [vmem:[%s2912_s2 + $0x40] sm:$0xff] %v1739_v20  ;;  %v1741_v48 = vadd.f32 %v1383_v30, %v2618_v50  ;;  %v1385_v40 = vpop.f32.mrb[11].mxu0  ;;  %1512 = vst.msk [vmem:[%s2912_s2 + $0x108] sm:$0xff] %vm1479_vm0, %v1442_v27  ;;  %v1446_v29 = vadd.f32 %v1445_v2, %v2668_v35 }
 0x18a   :  { %1488 = vst.msk [vmem:[%s2912_s2 + $0x48] sm:$0xff] %vm1479_vm0, %v1740_v25  ;;  %v1742_v49 = vadd.f32 %v1385_v40, %v2620_v51  ;;  %1513 = vst [vmem:[%s2912_s2 + $0x110] sm:$0xff] %v1444_v26 }
 0x18b   :  { %1489 = vst [vmem:[%s2912_s2 + $0x50] sm:$0xff] %v1741_v48  ;;  %1514 = vst.msk [vmem:[%s2912_s2 + $0x118] sm:$0xff] %vm1479_vm0, %v1446_v29 }
 0x18c   :  { %1490 = vst.msk [vmem:[%s2912_s2 + $0x58] sm:$0xff] %vm1479_vm0, %v1742_v49 }
 0x18d   :  { %v1449_v51 = vpop.f32.mrb[60].mxu1 }
 0x18e   :  { %v1389_v50 = vpop.f32.mrb[12].mxu0  ;;  %v1450_v35 = vadd.f32 %v1449_v51, %v2670_v38  ;;  %v1451_v36 = vpop.f32.mrb[61].mxu1 }
 0x18f   :  { %v1743_v32 = vadd.f32 %v1389_v50, %v2622_v52  ;;  %v1391_v34 = vpop.f32.mrb[13].mxu0  ;;  %v1452_v5 = vadd.f32 %v1451_v36, %v2672_v1  ;;  %v1453_v43 = vpop.f32.mrb[62].mxu1 }
 0x190   :  { %v1744_v41 = vadd.f32 %v1391_v34, %v2624_v53  ;;  %v1393_v42 = vpop.f32.mrb[14].mxu0  ;;  %1515 = vst [vmem:[%s2912_s2 + $0x120] sm:$0xff] %v1450_v35  ;;  %v1454_v38 = vadd.f32 %v1453_v43, %v2674_v6  ;;  %v1455_v11 = vpop.f32.mrb[63].mxu1 }
 0x191   :  { %1491 = vst [vmem:[%s2912_s2 + $0x60] sm:$0xff] %v1743_v32  ;;  %v1745_v52 = vadd.f32 %v1393_v42, %v2626_v54  ;;  %v1395_v8 = vpop.f32.mrb[15].mxu0  ;;  %1516 = vst.msk [vmem:[%s2912_s2 + $0x128] sm:$0xff] %vm1479_vm0, %v1452_v5  ;;  %v1456_v1 = vadd.f32 %v1455_v11, %v2676_v10 }
 0x192   :  { %1492 = vst.msk [vmem:[%s2912_s2 + $0x68] sm:$0xff] %vm1479_vm0, %v1744_v41  ;;  %v1746_v53 = vadd.f32 %v1395_v8, %v2628_v55  ;;  %1517 = vst [vmem:[%s2912_s2 + $0x130] sm:$0xff] %v1454_v38 }
 0x193   :  { %1493 = vst [vmem:[%s2912_s2 + $0x70] sm:$0xff] %v1745_v52  ;;  %1518 = vst.msk [vmem:[%s2912_s2 + $0x138] sm:$0xff] %vm1479_vm0, %v1456_v1 }
 0x194   :  { %1494 = vst.msk [vmem:[%s2912_s2 + $0x78] sm:$0xff] %vm1479_vm0, %v1746_v53 }
 0x195   :  { %v1459_v55 = vpop.f32.mrb[64].mxu1 }
 0x196   :  { %v1399_v54 = vpop.f32.mrb[16].mxu0  ;;  %v1460_v10 = vadd.f32 %v1459_v55, %v2678_v15  ;;  %v1461_v0 = vpop.f32.mrb[65].mxu1 }
 0x197   :  { %v1747_v6 = vadd.f32 %v1399_v54, %v2630_v56  ;;  %v1401_v39 = vpop.f32.mrb[17].mxu0  ;;  %v1462_v7 = vadd.f32 %v1461_v0, %v2680_v19  ;;  %v1463_v13 = vpop.f32.mrb[66].mxu1 }
 0x198   :  { %v1748_v4 = vadd.f32 %v1401_v39, %v2632_v57  ;;  %v1403_v12 = vpop.f32.mrb[18].mxu0  ;;  %1519 = vst [vmem:[%s2912_s2 + $0x140] sm:$0xff] %v1460_v10  ;;  %v1464_v15 = vadd.f32 %v1463_v13, %v2682_v24  ;;  %v1465_v14 = vpop.f32.mrb[67].mxu1 }
 0x199   :  { %1495 = vst [vmem:[%s2912_s2 + $0x80] sm:$0xff] %v1747_v6  ;;  %v1749_v56 = vadd.f32 %v1403_v12, %v2634_v58  ;;  %v1405_v44 = vpop.f32.mrb[19].mxu0  ;;  %1520 = vst.msk [vmem:[%s2912_s2 + $0x148] sm:$0xff] %vm1479_vm0, %v1462_v7  ;;  %v1466_v19 = vadd.f32 %v1465_v14, %v2684_v28 }
 0x19a   :  { %1496 = vst.msk [vmem:[%s2912_s2 + $0x88] sm:$0xff] %vm1479_vm0, %v1748_v4  ;;  %v1750_v57 = vadd.f32 %v1405_v44, %v2636_v59  ;;  %1521 = vst [vmem:[%s2912_s2 + $0x150] sm:$0xff] %v1464_v15 }
 0x19b   :  { %1497 = vst [vmem:[%s2912_s2 + $0x90] sm:$0xff] %v1749_v56  ;;  %1522 = vst.msk [vmem:[%s2912_s2 + $0x158] sm:$0xff] %vm1479_vm0, %v1466_v19 }
 0x19c   :  { %1498 = vst.msk [vmem:[%s2912_s2 + $0x98] sm:$0xff] %vm1479_vm0, %v1750_v57 }
 0x19d   :  { %v1469_v59 = vpop.f32.mrb[68].mxu1 }
 0x19e   :  { %v1409_v58 = vpop.f32.mrb[20].mxu0  ;;  %v1470_v28 = vadd.f32 %v1469_v59, %v2686_v33  ;;  %v1471_v18 = vpop.f32.mrb[69].mxu1 }
 0x19f   :  { %v1751_v24 = vadd.f32 %v1409_v58, %v2638_v60  ;;  %v1411_v16 = vpop.f32.mrb[21].mxu0  ;;  %v1472_v17 = vadd.f32 %v1471_v18, %v2688_v37  ;;  %v1473_v47 = vpop.f32.mrb[70].mxu1 }
 0x1a0   :  { %v1752_v45 = vadd.f32 %v1411_v16, %v2640_v61  ;;  %v1413_v46 = vpop.f32.mrb[22].mxu0  ;;  %1523 = vst [vmem:[%s2912_s2 + $0x160] sm:$0xff] %v1470_v28  ;;  %v1474_v33 = vadd.f32 %v1473_v47, %v2690_v3  ;;  %v1475_v23 = vpop.f32.mrb[71].mxu1 }
 0x1a1   :  { %1499 = vst [vmem:[%s2912_s2 + $0xa0] sm:$0xff] %v1751_v24  ;;  %v1753_v60 = vadd.f32 %v1413_v46, %v2642_v62  ;;  %v1415_v20 = vpop.f32.mrb[23].mxu0  ;;  %1524 = vst.msk [vmem:[%s2912_s2 + $0x168] sm:$0xff] %vm1479_vm0, %v1472_v17  ;;  %v1476_v37 = vadd.f32 %v1475_v23, %v2692_v9 }
 0x1a2   :  { %1500 = vst.msk [vmem:[%s2912_s2 + $0xa8] sm:$0xff] %vm1479_vm0, %v1752_v45  ;;  %v1754_v61 = vadd.f32 %v1415_v20, %v2644_v63  ;;  %1525 = vst [vmem:[%s2912_s2 + $0x170] sm:$0xff] %v1474_v33 }
 0x1a3   :  { %1501 = vst [vmem:[%s2912_s2 + $0xb0] sm:$0xff] %v1753_v60  ;;  %1526 = vst.msk [vmem:[%s2912_s2 + $0x178] sm:$0xff] %vm1479_vm0, %v1476_v37 }
 0x1a4   :  { %1502 = vst.msk [vmem:[%s2912_s2 + $0xb8] sm:$0xff] %vm1479_vm0, %v1754_v61 }

</bundles_post_ra>
